<compile_context>
chip_gen: v5e
topology: v5e:2x2
jax: 0.10.0
libtpu: 0.0.40
codegen_flags: <defaults>
</compile_context>

<pallas_src>
import functools

import jax
import jax.numpy as jnp
import numpy as np
from jax import lax
from jax.experimental import pallas as pl
from jax.experimental.pallas import tpu as pltpu

EPS = 1e-5  # BatchNorm2d default eps


# ---------------------------------------------------------------------------
# In-kernel compute shared by both passes.
# ---------------------------------------------------------------------------
def _shifted_prev_col(c1, wo):
    """Same rows, one output column to the left (x column 2j-1).

    c1: (9, TM) bf16.  Tiles always start at an output-row boundary, so the
    in-tile lane index mod Wo is the output column; column 0 reads the conv
    zero padding.
    """
    prev = jnp.concatenate([jnp.zeros_like(c1[:, :1]), c1[:, :-1]], axis=1)
    col = lax.broadcasted_iota(jnp.int32, (1, c1.shape[1]), 1) % wo
    return jnp.where(col == 0, jnp.zeros_like(prev), prev)


def _conv_pool_cat(p_ref, w_ref, wo):
    """Returns concat([conv, maxpool], axis=0) of shape (Cout+3, TM) in f32.

    p_ref: (18, TM) bf16 phase rows (see module docstring).
    w_ref: (3, Cout, 9) bf16: [0]=kw=1, [1]=kw=2, [2]=kw=0 weights, columns
           ordered (kh=1, kh=2, kh=0) x ci to match the phase rows.
    """
    p = p_ref[...]
    c0 = p[0:9, :]                        # taps at x column 2j
    c1 = p[9:18, :]                       # taps at x column 2j+1
    c1_prev = _shifted_prev_col(c1, wo)   # taps at x column 2j-1
    conv = (jnp.dot(w_ref[0], c0, preferred_element_type=jnp.float32)
            + jnp.dot(w_ref[1], c1, preferred_element_type=jnp.float32)
            + jnp.dot(w_ref[2], c1_prev, preferred_element_type=jnp.float32))
    # 2x2 / stride-2 maxpool == the four unshifted (kh,kw) in {1,2}^2 taps,
    # i.e. phase rows 0:3, 3:6, 9:12, 12:15.  f32 compares (v5e has no bf16 VPU).
    f32 = jnp.float32
    pool = jnp.maximum(
        jnp.maximum(p[0:3, :].astype(f32), p[3:6, :].astype(f32)),
        jnp.maximum(p[9:12, :].astype(f32), p[12:15, :].astype(f32)))
    return jnp.concatenate([conv, pool], axis=0)


def _stats_kernel(p_ref, w_ref, sum_ref, sumsq_ref, *, wo):
    """Pass 1: per-channel sum / sum-of-squares into this partition's accumulator."""
    @pl.when(jnp.logical_and(pl.program_id(1) == 0, pl.program_id(2) == 0))
    def _init():
        sum_ref[...] = jnp.zeros_like(sum_ref)
        sumsq_ref[...] = jnp.zeros_like(sumsq_ref)

    y = _conv_pool_cat(p_ref, w_ref, wo)                      # (C, TM) f32
    sum_ref[...] += jnp.sum(y, axis=1, keepdims=True)
    sumsq_ref[...] += jnp.sum(y * y, axis=1, keepdims=True)


def _apply_kernel(p_ref, w_ref, scale_ref, shift_ref, alpha_ref, out_ref, *, wo):
    """Pass 2: recompute conv/pool, apply folded BN (scale/shift) + PReLU."""
    y = _conv_pool_cat(p_ref, w_ref, wo) * scale_ref[...] + shift_ref[...]
    alpha = alpha_ref[0]
    out_ref[...] = jnp.where(y >= 0.0, y, alpha * y).astype(out_ref.dtype)


# ---------------------------------------------------------------------------
# Wrapper-side planning and XLA glue.
# ---------------------------------------------------------------------------
def _default_pixel_target():
    # v5e / v6e (128 MiB VMEM) comfortably fit a larger tile than v7x (64 MiB).
    try:
        vmem = int(pltpu.get_tpu_info().vmem_capacity_bytes)
    except Exception:
        return 32768
    return 65536 if vmem >= 100 * 1024 * 1024 else 32768


def _plan_pixel_tiles(ho, wo, target):
    """Pick a pixel tile TM (multiple of Wo, lane-aligned) and the padded HoWo."""
    howo = ho * wo
    if howo <= target:
        return howo, howo, 1
    g = int(np.gcd(wo, 128))
    kmin = 128 // g                      # smallest row count making TM % 128 == 0
    k = max((target // wo) // kmin, 1) * kmin
    for kk in range(k, 0, -kmin):        # prefer a k that divides Ho (no padding)
        if ho % kk == 0:
            k = kk
            break
    tm = k * wo
    howo_pad = -(-howo // tm) * tm
    return tm, howo_pad, howo_pad // tm


def _build_phases(x_nchw, ho, wo, howo_pad):
    """(N, 18, HoWo_pad) bf16 phase tensor (the only large streamed input)."""
    n = x_nchw.shape[0]
    xb = x_nchw.astype(jnp.bfloat16)
    a_c0 = xb[:, :, 0::2, 0::2]                                   # x[2i,   2j]
    b_c0 = xb[:, :, 1::2, 0::2]                                   # x[2i+1, 2j]
    a_c1 = xb[:, :, 0::2, 1::2]                                   # x[2i,   2j+1]
    b_c1 = xb[:, :, 1::2, 1::2]                                   # x[2i+1, 2j+1]
    zrow = jnp.zeros((n, 3, 1, wo), jnp.bfloat16)
    bm_c0 = jnp.concatenate([zrow, b_c0[:, :, :-1, :]], axis=2)   # x[2i-1, 2j]
    bm_c1 = jnp.concatenate([zrow, b_c1[:, :, :-1, :]], axis=2)   # x[2i-1, 2j+1]
    p18 = jnp.concatenate([a_c0, b_c0, bm_c0, a_c1, b_c1, bm_c1], axis=1)
    p18 = p18.reshape(n, 18, ho * wo)
    if howo_pad != ho * wo:
        p18 = jnp.pad(p18, ((0, 0), (0, 0), (0, howo_pad - ho * wo)))
    return p18


def _pack_weights(w_conv):
    """(Cout, 3, 3, 3) OIHW -> (3, Cout, 9) bf16, [kw=1, kw=2, kw=0] stacks,
    columns ordered (kh=1, kh=2, kh=0) x ci to match the phase rows."""
    def cols(kw):
        return jnp.concatenate(
            [w_conv[:, :, 1, kw], w_conv[:, :, 2, kw], w_conv[:, :, 0, kw]], axis=1)
    return jnp.stack([cols(1), cols(2), cols(0)], axis=0).astype(jnp.bfloat16)


def initial_block_forward(x_nchw, w_conv, gamma, beta, alpha, *,
                          pixel_tile=None, out_dtype=jnp.bfloat16):
    N, Cin, H, W = x_nchw.shape
    assert Cin == 3, "InitialBlock expects 3 input channels"
    assert H % 2 == 0 and W % 2 == 0, "even H, W so conv/pool spatial dims match"
    Cout = w_conv.shape[0]
    C = Cout + Cin
    Ho, Wo = H // 2, W // 2
    HoWo = Ho * Wo
    target = _default_pixel_target() if pixel_tile is None else pixel_tile
    TM, HoWoP, n_blk = _plan_pixel_tiles(Ho, Wo, target)

    # ---- XLA glue: phase tensor + packed conv weights ------------------------
    p18 = _build_phases(x_nchw, Ho, Wo, HoWoP)            # (N, 18, HoWoP) bf16
    w_pack = _pack_weights(w_conv)                        # (3, Cout, 9)  bf16

    out_isz = jnp.dtype(out_dtype).itemsize
    vmem_limit = int(max(32 * 1024 * 1024,
                         min(4 * 18 * TM * 2 + 4 * C * TM * out_isz + (8 << 20),
                             96 * 1024 * 1024)))

    # ---- pass 1: per-channel batch statistics (per-partition accumulators) ---
    P = 2 if n_blk % 2 == 0 else 1                        # keep both v7x cores busy
    nbpp = n_blk // P
    part_sum, part_sumsq = pl.pallas_call(
        functools.partial(_stats_kernel, wo=Wo),
        grid=(P, N, nbpp),
        in_specs=[
            pl.BlockSpec((None, 18, TM), lambda p, n, b: (n, 0, p * nbpp + b)),
            pl.BlockSpec((3, Cout, 9), lambda p, n, b: (0, 0, 0)),
        ],
        out_specs=(pl.BlockSpec((None, C, 1), lambda p, n, b: (p, 0, 0)),
                   pl.BlockSpec((None, C, 1), lambda p, n, b: (p, 0, 0))),
        out_shape=(jax.ShapeDtypeStruct((P, C, 1), jnp.float32),
                   jax.ShapeDtypeStruct((P, C, 1), jnp.float32)),
        compiler_params=pltpu.CompilerParams(
            dimension_semantics=("parallel", "arbitrary", "arbitrary"),
            vmem_limit_bytes=vmem_limit),
    )(p18, w_pack)
    ch_sum = jnp.sum(part_sum, axis=0)                    # (C, 1)
    ch_sumsq = jnp.sum(part_sumsq, axis=0)

    # Fold BN(batch stats) into a per-channel affine: y * scale + shift.
    # (Padded pixels are all-zero and contribute 0 to both sums; the count
    #  below is the true pixel count.)
    cnt = jnp.float32(N * HoWo)
    mean = ch_sum / cnt
    var = jnp.maximum(ch_sumsq / cnt - mean * mean, 0.0)
    # TODO(synk): for very large N*Ho*Wo use a shifted second moment to avoid
    # cancellation in E[y^2] - E[y]^2.
    scale = gamma.astype(jnp.float32).reshape(C, 1) * lax.rsqrt(var + EPS)
    shift = beta.astype(jnp.float32).reshape(C, 1) - mean * scale
    alpha_arr = jnp.asarray(alpha, jnp.float32).reshape(1)

    # ---- pass 2: conv/pool + affine BN + PReLU, lane-dense NC(H*W) output ----
    out = pl.pallas_call(
        functools.partial(_apply_kernel, wo=Wo),
        grid=(N, n_blk),
        in_specs=[
            pl.BlockSpec((None, 18, TM), lambda n, b: (n, 0, b)),
            pl.BlockSpec((3, Cout, 9), lambda n, b: (0, 0, 0)),
            pl.BlockSpec((C, 1), lambda n, b: (0, 0)),
            pl.BlockSpec((C, 1), lambda n, b: (0, 0)),
            pl.BlockSpec(memory_space=pltpu.MemorySpace.SMEM),
        ],
        out_specs=pl.BlockSpec((None, C, TM), lambda n, b: (n, 0, b)),
        out_shape=jax.ShapeDtypeStruct((N, C, HoWoP), out_dtype),
        compiler_params=pltpu.CompilerParams(
            dimension_semantics=("parallel", "parallel"),
            vmem_limit_bytes=vmem_limit),
    )(p18, w_pack, scale, shift, alpha_arr)

    if HoWoP != HoWo:
        out = out[:, :, :HoWo]          # extra XLA copy only for awkward Ho/Wo
    # (N, C, Ho*Wo) -> (N, C, Ho, Wo): trailing-dim split, no data movement.
    return out.reshape(N, C, Ho, Wo)


# ---------------------------------------------------------------------------
# Plain-JAX reference mirroring the PyTorch forward (training-mode BN).
# ---------------------------------------------------------------------------
def reference_forward(x_nchw, w_conv, gamma, beta, alpha):
    conv = lax.conv_general_dilated(
        x_nchw, w_conv, window_strides=(2, 2), padding=((1, 1), (1, 1)),
        dimension_numbers=("NCHW", "OIHW", "NCHW"))
    N, Cin, H, W = x_nchw.shape
    Hp, Wp = H // 2, W // 2
    pool = jnp.max(x_nchw[:, :, :2 * Hp, :2 * Wp].reshape(N, Cin, Hp, 2, Wp, 2),
                   axis=(3, 5))
    x = jnp.concatenate([conv, pool], axis=1)
    mean = jnp.mean(x, axis=(0, 2, 3), keepdims=True)
    var = jnp.mean(jnp.square(x - mean), axis=(0, 2, 3), keepdims=True)
    y = (x - mean) * lax.rsqrt(var + EPS) * gamma.reshape(1, -1, 1, 1) \
        + beta.reshape(1, -1, 1, 1)
    return jnp.where(y >= 0.0, y, alpha * y)


if __name__ == "__main__":
    key = jax.random.PRNGKey(0)
    k1, k2, k3, k4 = jax.random.split(key, 4)

    N, H, W = 2, 16, 16
    OUT_CH = 13          # conv-branch channels -> 16 total channels after concat

    # Deterministic synthetic inputs / parameters (no checkpoint loading).
    x = jax.random.normal(k1, (N, 3, H, W), jnp.float32)
    w_conv = jax.random.normal(k2, (OUT_CH, 3, 3, 3), jnp.float32) / np.sqrt(27.0)
    gamma = jax.random.uniform(k3, (OUT_CH + 3,), jnp.float32, 0.5, 1.5)
    beta = jax.random.normal(k4, (OUT_CH + 3,), jnp.float32) * 0.1
    alpha = 0.25         # nn.PReLU() default single-parameter init

    fwd = jax.jit(initial_block_forward)
    out = jax.block_until_ready(fwd(x, w_conv, gamma, beta, alpha))
    ref = reference_forward(x, w_conv, gamma, beta, alpha)

    assert out.shape == (N, OUT_CH + 3, H // 2, W // 2), out.shape
    # bf16 streaming (input phases / matmul operands) + bf16 output => 3e-2 tol.
    np.testing.assert_allclose(np.asarray(out.astype(jnp.float32)),
                               np.asarray(ref), atol=3e-2, rtol=3e-2)
    print("KERNEL_OK")
</pallas_src>

<mosaic_0001>
module attributes {stable_mosaic.version = 11 : i64} {
  func.func @_stats_kernel(%arg0: i32, %arg1: i32, %arg2: i32, %arg3: memref<1x18x64xbf16, #tpu.memory_space<vmem>>, %arg4: memref<3x13x9xbf16, #tpu.memory_space<vmem>>, %arg5: memref<1x16x1xf32, #tpu.memory_space<vmem>>, %arg6: memref<1x16x1xf32, #tpu.memory_space<vmem>>) attributes {dimension_semantics = [#tpu.dimension_semantics<parallel>, #tpu.dimension_semantics<arbitrary>, #tpu.dimension_semantics<arbitrary>], iteration_bounds = array<i64: 1, 2, 1>, scalar_prefetch = 0 : i64, scratch_operands = 0 : i64, tpu.core_type = #tpu.core_type<tc>, window_params = [{transform_indices = @transform_0, window_bounds = array<i64: 1, 18, 64>}, {pipeline_mode = #tpu.pipeline_mode<synchronous>, transform_indices = @transform_1, window_bounds = array<i64: 3, 13, 9>}, {transform_indices = @transform_2, window_bounds = array<i64: 1, 16, 1>}, {transform_indices = @transform_3, window_bounds = array<i64: 1, 16, 1>}]} {
    %c0_i32 = arith.constant 0 : i32
    %0 = arith.cmpi eq, %arg1, %c0_i32 : i32
    %c0_i32_0 = arith.constant 0 : i32
    %1 = arith.cmpi eq, %arg2, %c0_i32_0 : i32
    %2 = arith.andi %0, %1 : i1
    %3 = arith.extui %2 : i1 to i32
    %c0_i32_1 = arith.constant 0 : i32
    %4 = arith.cmpi ne, %3, %c0_i32_1 : i32
    scf.if %4 {
      %cst_34 = arith.constant 0.000000e+00 : f32
      %75 = vector.broadcast %cst_34 : f32 to vector<16x1xf32>
      %c0_35 = arith.constant 0 : index
      %c0_36 = arith.constant 0 : index
      %c0_37 = arith.constant 0 : index
      %76 = vector.load %arg5[%c0_35, %c0_36, %c0_37] : memref<1x16x1xf32, #tpu.memory_space<vmem>>, vector<1x16x1xf32>
      %77 = vector.shape_cast %76 : vector<1x16x1xf32> to vector<16x1xf32>
      %78 = vector.shape_cast %75 : vector<16x1xf32> to vector<1x16x1xf32>
      tpu.vector_store %arg5[%c0_35, %c0_36, %c0_37], %78 {strides = array<i32>} : memref<1x16x1xf32, #tpu.memory_space<vmem>>, vector<1x16x1xf32>,
      %cst_38 = arith.constant 0.000000e+00 : f32
      %79 = vector.broadcast %cst_38 : f32 to vector<16x1xf32>
      %c0_39 = arith.constant 0 : index
      %c0_40 = arith.constant 0 : index
      %c0_41 = arith.constant 0 : index
      %80 = vector.load %arg6[%c0_39, %c0_40, %c0_41] : memref<1x16x1xf32, #tpu.memory_space<vmem>>, vector<1x16x1xf32>
      %81 = vector.shape_cast %80 : vector<1x16x1xf32> to vector<16x1xf32>
      %82 = vector.shape_cast %79 : vector<16x1xf32> to vector<1x16x1xf32>
      tpu.vector_store %arg6[%c0_39, %c0_40, %c0_41], %82 {strides = array<i32>} : memref<1x16x1xf32, #tpu.memory_space<vmem>>, vector<1x16x1xf32>,
    } else {
    }
    %c0 = arith.constant 0 : index
    %c0_2 = arith.constant 0 : index
    %c0_3 = arith.constant 0 : index
    %5 = vector.load %arg3[%c0, %c0_2, %c0_3] : memref<1x18x64xbf16, #tpu.memory_space<vmem>>, vector<1x18x64xbf16>
    %6 = vector.shape_cast %5 : vector<1x18x64xbf16> to vector<18x64xbf16>
    %7 = vector.extract_strided_slice %6 {offsets = [0, 0], sizes = [9, 64], strides = [1, 1]} : vector<18x64xbf16> to vector<9x64xbf16>
    %8 = vector.extract_strided_slice %6 {offsets = [9, 0], sizes = [9, 64], strides = [1, 1]} : vector<18x64xbf16> to vector<9x64xbf16>
    %cst = arith.constant 0.000000e+00 : bf16
    %9 = vector.broadcast %cst : bf16 to vector<9x1xbf16>
    %10 = vector.extract_strided_slice %8 {offsets = [0, 0], sizes = [9, 63], strides = [1, 1]} : vector<9x64xbf16> to vector<9x63xbf16>
    %11 = tpu.concatenate %9, %10 in 1 : vector<9x1xbf16>, vector<9x63xbf16> -> vector<9x64xbf16>
    %12 = tpu.iota {dimensions = array<i32: 1>} : vector<1x64xi32>
    %c8_i32 = arith.constant 8 : i32
    %c0_i32_4 = arith.constant 0 : i32
    %13 = arith.cmpi eq, %c8_i32, %c0_i32_4 : i32
    %c1_i32 = arith.constant 1 : i32
    %14 = arith.select %13, %c1_i32, %c8_i32 : i32
    %15 = vector.broadcast %14 : i32 to vector<1x64xi32>
    %16 = arith.remsi %12, %15 : vector<1x64xi32>
    %c0_i32_5 = arith.constant 0 : i32
    %17 = vector.broadcast %c0_i32_5 : i32 to vector<1x64xi32>
    %18 = arith.cmpi ne, %16, %17 : vector<1x64xi32>
    %c0_i32_6 = arith.constant 0 : i32
    %19 = vector.broadcast %c0_i32_6 : i32 to vector<1x64xi32>
    %20 = arith.cmpi slt, %16, %19 : vector<1x64xi32>
    %c0_i32_7 = arith.constant 0 : i32
    %21 = arith.cmpi slt, %14, %c0_i32_7 : i32
    %22 = vector.broadcast %21 : i1 to vector<1x64xi1>
    %23 = vector.broadcast %22 : vector<1x64xi1> to vector<1x64xi1>
    %24 = arith.xori %20, %23 : vector<1x64xi1>
    %25 = arith.andi %24, %18 : vector<1x64xi1>
    %26 = vector.broadcast %14 : i32 to vector<1x64xi32>
    %27 = arith.addi %16, %26 : vector<1x64xi32>
    %28 = arith.select %25, %27, %16 : vector<1x64xi1>, vector<1x64xi32>
    %c0_i32_8 = arith.constant 0 : i32
    %29 = vector.broadcast %c0_i32_8 : i32 to vector<1x64xi32>
    %30 = arith.cmpi eq, %28, %29 : vector<1x64xi32>
    %cst_9 = arith.constant 0.000000e+00 : bf16
    %31 = vector.broadcast %cst_9 : bf16 to vector<9x64xbf16>
    %32 = vector.shape_cast %30 : vector<1x64xi1> to vector<1x64xi1>
    %33 = vector.broadcast %32 : vector<1x64xi1> to vector<9x64xi1>
    %34 = arith.select %33, %31, %11 : vector<9x64xi1>, vector<9x64xbf16>
    %c0_10 = arith.constant 0 : index
    %c0_11 = arith.constant 0 : index
    %c0_12 = arith.constant 0 : index
    %35 = vector.load %arg4[%c0_10, %c0_11, %c0_12] : memref<3x13x9xbf16, #tpu.memory_space<vmem>>, vector<1x13x9xbf16>
    %36 = vector.shape_cast %35 : vector<1x13x9xbf16> to vector<13x9xbf16>
    %cst_13 = arith.constant dense<0.000000e+00> : vector<13x64xf32>
    %37 = tpu.matmul %36, %7, %cst_13 {dimension_numbers = #tpu.dot_dimension_numbers<[1], [0], [0], [1], [0, 0, 1, 1], [], []>} : vector<13x9xbf16>, vector<9x64xbf16>, vector<13x64xf32> -> vector<13x64xf32>
    %c1 = arith.constant 1 : index
    %c0_14 = arith.constant 0 : index
    %c0_15 = arith.constant 0 : index
    %38 = vector.load %arg4[%c1, %c0_14, %c0_15] : memref<3x13x9xbf16, #tpu.memory_space<vmem>>, vector<1x13x9xbf16>
    %39 = vector.shape_cast %38 : vector<1x13x9xbf16> to vector<13x9xbf16>
    %cst_16 = arith.constant dense<0.000000e+00> : vector<13x64xf32>
    %40 = tpu.matmul %39, %8, %cst_16 {dimension_numbers = #tpu.dot_dimension_numbers<[1], [0], [0], [1], [0, 0, 1, 1], [], []>} : vector<13x9xbf16>, vector<9x64xbf16>, vector<13x64xf32> -> vector<13x64xf32>
    %41 = arith.addf %37, %40 : vector<13x64xf32>
    %c2 = arith.constant 2 : index
    %c0_17 = arith.constant 0 : index
    %c0_18 = arith.constant 0 : index
    %42 = vector.load %arg4[%c2, %c0_17, %c0_18] : memref<3x13x9xbf16, #tpu.memory_space<vmem>>, vector<1x13x9xbf16>
    %43 = vector.shape_cast %42 : vector<1x13x9xbf16> to vector<13x9xbf16>
    %cst_19 = arith.constant dense<0.000000e+00> : vector<13x64xf32>
    %44 = tpu.matmul %43, %34, %cst_19 {dimension_numbers = #tpu.dot_dimension_numbers<[1], [0], [0], [1], [0, 0, 1, 1], [], []>} : vector<13x9xbf16>, vector<9x64xbf16>, vector<13x64xf32> -> vector<13x64xf32>
    %45 = arith.addf %41, %44 : vector<13x64xf32>
    %46 = vector.extract_strided_slice %6 {offsets = [0, 0], sizes = [3, 64], strides = [1, 1]} : vector<18x64xbf16> to vector<3x64xbf16>
    %47 = arith.extf %46 : vector<3x64xbf16> to vector<3x64xf32>
    %48 = vector.extract_strided_slice %6 {offsets = [3, 0], sizes = [3, 64], strides = [1, 1]} : vector<18x64xbf16> to vector<3x64xbf16>
    %49 = arith.extf %48 : vector<3x64xbf16> to vector<3x64xf32>
    %50 = arith.maximumf %47, %49 : vector<3x64xf32>
    %51 = vector.extract_strided_slice %6 {offsets = [9, 0], sizes = [3, 64], strides = [1, 1]} : vector<18x64xbf16> to vector<3x64xbf16>
    %52 = arith.extf %51 : vector<3x64xbf16> to vector<3x64xf32>
    %53 = vector.extract_strided_slice %6 {offsets = [12, 0], sizes = [3, 64], strides = [1, 1]} : vector<18x64xbf16> to vector<3x64xbf16>
    %54 = arith.extf %53 : vector<3x64xbf16> to vector<3x64xf32>
    %55 = arith.maximumf %52, %54 : vector<3x64xf32>
    %56 = arith.maximumf %50, %55 : vector<3x64xf32>
    %57 = tpu.concatenate %45, %56 in 0 : vector<13x64xf32>, vector<3x64xf32> -> vector<16x64xf32>
    %c0_20 = arith.constant 0 : index
    %c0_21 = arith.constant 0 : index
    %c0_22 = arith.constant 0 : index
    %58 = vector.load %arg5[%c0_20, %c0_21, %c0_22] : memref<1x16x1xf32, #tpu.memory_space<vmem>>, vector<1x16x1xf32>
    %59 = vector.shape_cast %58 : vector<1x16x1xf32> to vector<16x1xf32>
    %cst_23 = arith.constant dense<0.000000e+00> : vector<16xf32>
    %60 = vector.multi_reduction <add>, %57, %cst_23 [1] : vector<16x64xf32> to vector<16xf32>
    %61 = vector.shape_cast %60 : vector<16xf32> to vector<16x1xf32>
    %62 = arith.addf %59, %61 : vector<16x1xf32>
    %c0_24 = arith.constant 0 : index
    %c0_25 = arith.constant 0 : index
    %c0_26 = arith.constant 0 : index
    %63 = vector.load %arg5[%c0_24, %c0_25, %c0_26] : memref<1x16x1xf32, #tpu.memory_space<vmem>>, vector<1x16x1xf32>
    %64 = vector.shape_cast %63 : vector<1x16x1xf32> to vector<16x1xf32>
    %65 = vector.shape_cast %62 : vector<16x1xf32> to vector<1x16x1xf32>
    tpu.vector_store %arg5[%c0_24, %c0_25, %c0_26], %65 {strides = array<i32>} : memref<1x16x1xf32, #tpu.memory_space<vmem>>, vector<1x16x1xf32>,
    %c0_27 = arith.constant 0 : index
    %c0_28 = arith.constant 0 : index
    %c0_29 = arith.constant 0 : index
    %66 = vector.load %arg6[%c0_27, %c0_28, %c0_29] : memref<1x16x1xf32, #tpu.memory_space<vmem>>, vector<1x16x1xf32>
    %67 = vector.shape_cast %66 : vector<1x16x1xf32> to vector<16x1xf32>
    %68 = arith.mulf %57, %57 : vector<16x64xf32>
    %cst_30 = arith.constant dense<0.000000e+00> : vector<16xf32>
    %69 = vector.multi_reduction <add>, %68, %cst_30 [1] : vector<16x64xf32> to vector<16xf32>
    %70 = vector.shape_cast %69 : vector<16xf32> to vector<16x1xf32>
    %71 = arith.addf %67, %70 : vector<16x1xf32>
    %c0_31 = arith.constant 0 : index
    %c0_32 = arith.constant 0 : index
    %c0_33 = arith.constant 0 : index
    %72 = vector.load %arg6[%c0_31, %c0_32, %c0_33] : memref<1x16x1xf32, #tpu.memory_space<vmem>>, vector<1x16x1xf32>
    %73 = vector.shape_cast %72 : vector<1x16x1xf32> to vector<16x1xf32>
    %74 = vector.shape_cast %71 : vector<16x1xf32> to vector<1x16x1xf32>
    tpu.vector_store %arg6[%c0_31, %c0_32, %c0_33], %74 {strides = array<i32>} : memref<1x16x1xf32, #tpu.memory_space<vmem>>, vector<1x16x1xf32>,
    return
  }
  func.func @transform_0(%arg0: i32, %arg1: i32, %arg2: i32) -> (i32, i32, i32) {
    %c1_i32 = arith.constant 1 : i32
    %0 = arith.muli %arg0, %c1_i32 : i32
    %1 = arith.addi %0, %arg2 : i32
    %c0_i32 = arith.constant 0 : i32
    %c0_i32_0 = arith.constant 0 : i32
    return %arg1, %c0_i32, %1 : i32, i32, i32
  }
  func.func @transform_1(%arg0: i32, %arg1: i32, %arg2: i32) -> (i32, i32, i32) {
    %c0_i32 = arith.constant 0 : i32
    %c0_i32_0 = arith.constant 0 : i32
    %c0_i32_1 = arith.constant 0 : i32
    %c0_i32_2 = arith.constant 0 : i32
    return %c0_i32, %c0_i32_0, %c0_i32_1 : i32, i32, i32
  }
  func.func @transform_2(%arg0: i32, %arg1: i32, %arg2: i32) -> (i32, i32, i32) {
    %c0_i32 = arith.constant 0 : i32
    %c0_i32_0 = arith.constant 0 : i32
    %c0_i32_1 = arith.constant 0 : i32
    return %arg0, %c0_i32, %c0_i32_0 : i32, i32, i32
  }
  func.func @transform_3(%arg0: i32, %arg1: i32, %arg2: i32) -> (i32, i32, i32) {
    %c0_i32 = arith.constant 0 : i32
    %c0_i32_0 = arith.constant 0 : i32
    %c0_i32_1 = arith.constant 0 : i32
    return %arg0, %c0_i32, %c0_i32_0 : i32, i32, i32
  }
}

module attributes {stable_mosaic.version = 11 : i64} {
  func.func @_apply_kernel(%arg0: i32, %arg1: i32, %arg2: memref<1x18x64xbf16, #tpu.memory_space<vmem>>, %arg3: memref<3x13x9xbf16, #tpu.memory_space<vmem>>, %arg4: memref<16x1xf32, #tpu.memory_space<vmem>>, %arg5: memref<16x1xf32, #tpu.memory_space<vmem>>, %arg6: memref<1xf32, #tpu.memory_space<smem>>, %arg7: memref<1x16x64xbf16, #tpu.memory_space<vmem>>) attributes {dimension_semantics = [#tpu.dimension_semantics<parallel>, #tpu.dimension_semantics<parallel>], iteration_bounds = array<i64: 2, 1>, scalar_prefetch = 0 : i64, scratch_operands = 0 : i64, tpu.core_type = #tpu.core_type<tc>, window_params = [{transform_indices = @transform_0, window_bounds = array<i64: 1, 18, 64>}, {pipeline_mode = #tpu.pipeline_mode<synchronous>, transform_indices = @transform_1, window_bounds = array<i64: 3, 13, 9>}, {pipeline_mode = #tpu.pipeline_mode<synchronous>, transform_indices = @transform_2, window_bounds = array<i64: 16, 1>}, {pipeline_mode = #tpu.pipeline_mode<synchronous>, transform_indices = @transform_3, window_bounds = array<i64: 16, 1>}, {transform_indices = @transform_4, window_bounds = array<i64: 1>}, {transform_indices = @transform_5, window_bounds = array<i64: 1, 16, 64>}]} {
    %c0 = arith.constant 0 : index
    %c0_0 = arith.constant 0 : index
    %c0_1 = arith.constant 0 : index
    %0 = vector.load %arg2[%c0, %c0_0, %c0_1] : memref<1x18x64xbf16, #tpu.memory_space<vmem>>, vector<1x18x64xbf16>
    %1 = vector.shape_cast %0 : vector<1x18x64xbf16> to vector<18x64xbf16>
    %2 = vector.extract_strided_slice %1 {offsets = [0, 0], sizes = [9, 64], strides = [1, 1]} : vector<18x64xbf16> to vector<9x64xbf16>
    %3 = vector.extract_strided_slice %1 {offsets = [9, 0], sizes = [9, 64], strides = [1, 1]} : vector<18x64xbf16> to vector<9x64xbf16>
    %cst = arith.constant 0.000000e+00 : bf16
    %4 = vector.broadcast %cst : bf16 to vector<9x1xbf16>
    %5 = vector.extract_strided_slice %3 {offsets = [0, 0], sizes = [9, 63], strides = [1, 1]} : vector<9x64xbf16> to vector<9x63xbf16>
    %6 = tpu.concatenate %4, %5 in 1 : vector<9x1xbf16>, vector<9x63xbf16> -> vector<9x64xbf16>
    %7 = tpu.iota {dimensions = array<i32: 1>} : vector<1x64xi32>
    %c8_i32 = arith.constant 8 : i32
    %c0_i32 = arith.constant 0 : i32
    %8 = arith.cmpi eq, %c8_i32, %c0_i32 : i32
    %c1_i32 = arith.constant 1 : i32
    %9 = arith.select %8, %c1_i32, %c8_i32 : i32
    %10 = vector.broadcast %9 : i32 to vector<1x64xi32>
    %11 = arith.remsi %7, %10 : vector<1x64xi32>
    %c0_i32_2 = arith.constant 0 : i32
    %12 = vector.broadcast %c0_i32_2 : i32 to vector<1x64xi32>
    %13 = arith.cmpi ne, %11, %12 : vector<1x64xi32>
    %c0_i32_3 = arith.constant 0 : i32
    %14 = vector.broadcast %c0_i32_3 : i32 to vector<1x64xi32>
    %15 = arith.cmpi slt, %11, %14 : vector<1x64xi32>
    %c0_i32_4 = arith.constant 0 : i32
    %16 = arith.cmpi slt, %9, %c0_i32_4 : i32
    %17 = vector.broadcast %16 : i1 to vector<1x64xi1>
    %18 = vector.broadcast %17 : vector<1x64xi1> to vector<1x64xi1>
    %19 = arith.xori %15, %18 : vector<1x64xi1>
    %20 = arith.andi %19, %13 : vector<1x64xi1>
    %21 = vector.broadcast %9 : i32 to vector<1x64xi32>
    %22 = arith.addi %11, %21 : vector<1x64xi32>
    %23 = arith.select %20, %22, %11 : vector<1x64xi1>, vector<1x64xi32>
    %c0_i32_5 = arith.constant 0 : i32
    %24 = vector.broadcast %c0_i32_5 : i32 to vector<1x64xi32>
    %25 = arith.cmpi eq, %23, %24 : vector<1x64xi32>
    %cst_6 = arith.constant 0.000000e+00 : bf16
    %26 = vector.broadcast %cst_6 : bf16 to vector<9x64xbf16>
    %27 = vector.shape_cast %25 : vector<1x64xi1> to vector<1x64xi1>
    %28 = vector.broadcast %27 : vector<1x64xi1> to vector<9x64xi1>
    %29 = arith.select %28, %26, %6 : vector<9x64xi1>, vector<9x64xbf16>
    %c0_7 = arith.constant 0 : index
    %c0_8 = arith.constant 0 : index
    %c0_9 = arith.constant 0 : index
    %30 = vector.load %arg3[%c0_7, %c0_8, %c0_9] : memref<3x13x9xbf16, #tpu.memory_space<vmem>>, vector<1x13x9xbf16>
    %31 = vector.shape_cast %30 : vector<1x13x9xbf16> to vector<13x9xbf16>
    %cst_10 = arith.constant dense<0.000000e+00> : vector<13x64xf32>
    %32 = tpu.matmul %31, %2, %cst_10 {dimension_numbers = #tpu.dot_dimension_numbers<[1], [0], [0], [1], [0, 0, 1, 1], [], []>} : vector<13x9xbf16>, vector<9x64xbf16>, vector<13x64xf32> -> vector<13x64xf32>
    %c1 = arith.constant 1 : index
    %c0_11 = arith.constant 0 : index
    %c0_12 = arith.constant 0 : index
    %33 = vector.load %arg3[%c1, %c0_11, %c0_12] : memref<3x13x9xbf16, #tpu.memory_space<vmem>>, vector<1x13x9xbf16>
    %34 = vector.shape_cast %33 : vector<1x13x9xbf16> to vector<13x9xbf16>
    %cst_13 = arith.constant dense<0.000000e+00> : vector<13x64xf32>
    %35 = tpu.matmul %34, %3, %cst_13 {dimension_numbers = #tpu.dot_dimension_numbers<[1], [0], [0], [1], [0, 0, 1, 1], [], []>} : vector<13x9xbf16>, vector<9x64xbf16>, vector<13x64xf32> -> vector<13x64xf32>
    %36 = arith.addf %32, %35 : vector<13x64xf32>
    %c2 = arith.constant 2 : index
    %c0_14 = arith.constant 0 : index
    %c0_15 = arith.constant 0 : index
    %37 = vector.load %arg3[%c2, %c0_14, %c0_15] : memref<3x13x9xbf16, #tpu.memory_space<vmem>>, vector<1x13x9xbf16>
    %38 = vector.shape_cast %37 : vector<1x13x9xbf16> to vector<13x9xbf16>
    %cst_16 = arith.constant dense<0.000000e+00> : vector<13x64xf32>
    %39 = tpu.matmul %38, %29, %cst_16 {dimension_numbers = #tpu.dot_dimension_numbers<[1], [0], [0], [1], [0, 0, 1, 1], [], []>} : vector<13x9xbf16>, vector<9x64xbf16>, vector<13x64xf32> -> vector<13x64xf32>
    %40 = arith.addf %36, %39 : vector<13x64xf32>
    %41 = vector.extract_strided_slice %1 {offsets = [0, 0], sizes = [3, 64], strides = [1, 1]} : vector<18x64xbf16> to vector<3x64xbf16>
    %42 = arith.extf %41 : vector<3x64xbf16> to vector<3x64xf32>
    %43 = vector.extract_strided_slice %1 {offsets = [3, 0], sizes = [3, 64], strides = [1, 1]} : vector<18x64xbf16> to vector<3x64xbf16>
    %44 = arith.extf %43 : vector<3x64xbf16> to vector<3x64xf32>
    %45 = arith.maximumf %42, %44 : vector<3x64xf32>
    %46 = vector.extract_strided_slice %1 {offsets = [9, 0], sizes = [3, 64], strides = [1, 1]} : vector<18x64xbf16> to vector<3x64xbf16>
    %47 = arith.extf %46 : vector<3x64xbf16> to vector<3x64xf32>
    %48 = vector.extract_strided_slice %1 {offsets = [12, 0], sizes = [3, 64], strides = [1, 1]} : vector<18x64xbf16> to vector<3x64xbf16>
    %49 = arith.extf %48 : vector<3x64xbf16> to vector<3x64xf32>
    %50 = arith.maximumf %47, %49 : vector<3x64xf32>
    %51 = arith.maximumf %45, %50 : vector<3x64xf32>
    %52 = tpu.concatenate %40, %51 in 0 : vector<13x64xf32>, vector<3x64xf32> -> vector<16x64xf32>
    %c0_17 = arith.constant 0 : index
    %c0_18 = arith.constant 0 : index
    %53 = vector.load %arg4[%c0_17, %c0_18] : memref<16x1xf32, #tpu.memory_space<vmem>>, vector<16x1xf32>
    %54 = vector.broadcast %53 : vector<16x1xf32> to vector<16x64xf32>
    %55 = arith.mulf %52, %54 : vector<16x64xf32>
    %c0_19 = arith.constant 0 : index
    %c0_20 = arith.constant 0 : index
    %56 = vector.load %arg5[%c0_19, %c0_20] : memref<16x1xf32, #tpu.memory_space<vmem>>, vector<16x1xf32>
    %57 = vector.broadcast %56 : vector<16x1xf32> to vector<16x64xf32>
    %58 = arith.addf %55, %57 : vector<16x64xf32>
    %c0_21 = arith.constant 0 : index
    %59 = memref.load %arg6[%c0_21] : memref<1xf32, #tpu.memory_space<smem>>
    %cst_22 = arith.constant 0.000000e+00 : f32
    %60 = vector.broadcast %cst_22 : f32 to vector<16x64xf32>
    %61 = arith.cmpf oge, %58, %60 : vector<16x64xf32>
    %62 = vector.broadcast %59 : f32 to vector<16x64xf32>
    %63 = arith.mulf %62, %58 : vector<16x64xf32>
    %64 = arith.select %61, %58, %63 : vector<16x64xi1>, vector<16x64xf32>
    %65 = arith.truncf %64 : vector<16x64xf32> to vector<16x64xbf16>
    %c0_23 = arith.constant 0 : index
    %c0_24 = arith.constant 0 : index
    %c0_25 = arith.constant 0 : index
    %66 = vector.load %arg7[%c0_23, %c0_24, %c0_25] : memref<1x16x64xbf16, #tpu.memory_space<vmem>>, vector<1x16x64xbf16>
    %67 = vector.shape_cast %66 : vector<1x16x64xbf16> to vector<16x64xbf16>
    %68 = vector.shape_cast %65 : vector<16x64xbf16> to vector<1x16x64xbf16>
    tpu.vector_store %arg7[%c0_23, %c0_24, %c0_25], %68 {strides = array<i32>} : memref<1x16x64xbf16, #tpu.memory_space<vmem>>, vector<1x16x64xbf16>,
    return
  }
  func.func @transform_0(%arg0: i32, %arg1: i32) -> (i32, i32, i32) {
    %c0_i32 = arith.constant 0 : i32
    %c0_i32_0 = arith.constant 0 : i32
    return %arg0, %c0_i32, %arg1 : i32, i32, i32
  }
  func.func @transform_1(%arg0: i32, %arg1: i32) -> (i32, i32, i32) {
    %c0_i32 = arith.constant 0 : i32
    %c0_i32_0 = arith.constant 0 : i32
    %c0_i32_1 = arith.constant 0 : i32
    %c0_i32_2 = arith.constant 0 : i32
    return %c0_i32, %c0_i32_0, %c0_i32_1 : i32, i32, i32
  }
  func.func @transform_2(%arg0: i32, %arg1: i32) -> (i32, i32) {
    %c0_i32 = arith.constant 0 : i32
    %c0_i32_0 = arith.constant 0 : i32
    %c0_i32_1 = arith.constant 0 : i32
    return %c0_i32, %c0_i32_0 : i32, i32
  }
  func.func @transform_3(%arg0: i32, %arg1: i32) -> (i32, i32) {
    %c0_i32 = arith.constant 0 : i32
    %c0_i32_0 = arith.constant 0 : i32
    %c0_i32_1 = arith.constant 0 : i32
    return %c0_i32, %c0_i32_0 : i32, i32
  }
  func.func @transform_4(%arg0: i32, %arg1: i32) -> i32 {
    %c0_i32 = arith.constant 0 : i32
    %c0_i32_0 = arith.constant 0 : i32
    return %c0_i32 : i32
  }
  func.func @transform_5(%arg0: i32, %arg1: i32) -> (i32, i32, i32) {
    %c0_i32 = arith.constant 0 : i32
    %c0_i32_0 = arith.constant 0 : i32
    return %arg0, %c0_i32, %arg1 : i32, i32, i32
  }
}

</mosaic_0001>

<bundles_post_ra>
// kernel: initial_block_forward.3
= control target key start
LH: loop header
LB: loop body
LE: loop exit
PB: predicated region body
PF: predicated region fallthrough
CT: control target
= control target key end

     0   :  { %s669_s20 = smov 0   ;;  %s671_s21 = smov 0   ;;  %s745_s0 = inlined_call_operand.vmem [shape: bf16[2,18,64], index: 0, kind: input, shape index: {}]   ;;  %s746_s1 = inlined_call_operand.vmem [shape: bf16[3,13,9], index: 1, kind: input, shape index: {}]   ;;  %s747_s2 = inlined_call_operand.vmem [shape: f32[16,1], index: 2, kind: input, shape index: {}]   ;;  %s748_s3 = inlined_call_operand.vmem [shape: f32[16,1], index: 3, kind: input, shape index: {}]   ;;  %s749_s4 = inlined_call_operand.<no memory space> [shape: f32[1], index: 4, kind: input, shape index: {}]   ;;  %s750_s5 = inlined_call_operand.vmem [shape: bf16[2,16,64], index: 5, kind: output, shape index: {}]  }
   0x1   :  { %10 = sst [smem:[#allocation2]] %s749_s4  ;;  %s673_s22 = smov 0  }
   0x2 LB: > { %s28_s4 = sadd.s32 1, %s627_s21  ;;  %p549_p0 = scmp.ge.s32.totalorder %s631_s22, 1  ;;  %s631_s22 = sphi %s673_s22, %s16_s22   ;;  %s627_s21 = sphi %s671_s21, %s752_s21   ;;  %s623_s20 = sphi %s669_s20, %s751_s20  }
   0x3   : > { %p30_p1 = scmp.ge.s32.totalorder %s28_s4, 2  ;;  %p207_p2 = scmp.lt.s32.totalorder %s631_s22, 3 }
   0x5   : > { %s754_s4 = smov (%p30_p1, %s28_s4), 0  ;;  %p208_p3 = pnand %p549_p0, %p207_p2 }
   0x6   : > { %p241_p4 = scmp.lt.s32.totalorder (!%p208_p3), %s623_s20, 1  ;;  %s633_s27 = smov (!%p208_p3), 1  }
   0x7   : > { %211 = sbr.rel (%p208_p3) target bundleno = 302 (0x12e), region = 40 }
   0xc   : > { %s756_s20 = smov (!%p241_p4, %s623_s20), 1  ;;  %v634_v11 = vmov 0   ;;  %vm324_vm0 = vcmask 1043456   ;;  %vm325_vm1 = vcmask 1044480   ;;  %v635_v12 = vmov 65535   ;;  %v422_v27 = vld [vmem:[%s747_s2 + $0x8] sm:$0xff] }
   0xd   : > { %s578_s23 = smul.u32 12, %s756_s20  ;;  %607 = vset.pattern.permute.xlu1 %v634_v11  ;;  %606 = vset.pattern.permute.xlu0 %v634_v11  ;;  %v326_v13 = vsel %vm324_vm0, 4294967295, %v635_v12  ;;  %v282_v18 = vlaneseq  ;;  %v557_v19 = vld [vmem:[%s746_s1 + $0x8] sm:$0xf]  ;;  %v576_v20 = vld [vmem:[%s746_s1 + $0x8] sm:$0x70]  ;;  %v304_v35 = vunpack.c.l.b16 %v634_v11  ;;  %v305_v36 = vunpack.c.h.b16 %v634_v11 }
   0xe   : > { %608 = vset.pattern.permute.xlu2 %v634_v11  ;;  %v327_v15 = vsel %vm325_vm1, %v326_v13, 0  ;;  %vm320_vm2 = vcmask 72704   ;;  %v558_v21 = vor.u32 %v576_v20, %v557_v19  ;;  %v562_v22 = vld [vmem:[%s746_s1] sm:$0xf]  ;;  %v575_v23 = vld [vmem:[%s746_s1] sm:$0x70]  ;;  %430 = vperm.xlu1 %607, %v422_v27  }
   0xf   : > { %s248_s26 = scalar_lea.vmem %s745_s0, %s578_s23  ;;  %v563_v24 = vor.u32 %v575_v23, %v562_v22  ;;  %v283_v25 = vand.u32 127, %v282_v18  ;;  %v421_v28 = vld [vmem:[%s747_s2] sm:$0xff]  ;;  %v436_v29 = vld [vmem:[%s748_s3 + $0x8] sm:$0xff]  ;;  %vm277_vm7 = vcmask 7168   ;;  %v569_v39 = vld [vmem:[%s746_s1 + $0x10] sm:$0xf] }
  0x10   : > { %v693_v0 = vld [vmem:[%s248_s26 + $0x4] sm:$0xf]  ;;  %v262_v1 = vld [vmem:[%s248_s26 + $0x8] sm:$0x1]  ;;  %v260_v9 = vld [vmem:[%s248_s26] sm:$0xf]  ;;  %444 = vperm.xlu2 %608, %v436_v29  }
  0x11   : > { %v265_v2 = vunpack.c.l.b16 %v693_v0  ;;  %v266_v3 = vunpack.c.l.b16 %v262_v1  ;;  %v351_v10 = vunpack.c.l.b16 %v260_v9  ;;  %v288_v26 = vand.u32 7, %v283_v25  ;;  %v435_v30 = vld [vmem:[%s748_s3] sm:$0xff]  ;;  %v577_v40 = vld [vmem:[%s746_s1 + $0x10] sm:$0x70]  ;;  %s449_s26 = sld [smem:[#allocation2]] }
  0x12   : > { %v570_v43 = vor.u32 %v577_v40, %v569_v39  ;;  %v408_v44 = vunpack.c.l.bf16 %v693_v0  ;;  %v403_v45 = vunpack.c.l.bf16 %v260_v9  ;;  %vm459_vm10 = vcmask 519168  }
  0x13   : > { %v267_v4 = vpack.c.b16 %v266_v3, %v265_v2  ;;  %v352_v14 = vpack.c.b16 %v265_v2, %v351_v10  ;;  %vm296_vm3 = vcmp.eq.s32.totalorder %v288_v26, 0 }
  0x14   : > { %vm299_vm4 = vmpackc.low %vm296_vm3, %vm296_vm3  ;;  %v410_v46 = vrot.slane %v408_v44, 3  ;;  %v405_v47 = vrot.slane %v403_v45, 3 }
  0x15   : > { %v269_v5 = vshrl.u32 %v267_v4, 16  ;;  %v271_v6 = vshll.u32 %v267_v4, 16  ;;  %v357_v17 = vand.u32 %v352_v14, %v327_v15  ;;  %v300_v31 = vsel %vm299_vm4, 65537, %v634_v11 }
  0x16   : > { %439 = vperm.xlu1 %607, %v435_v30   ;;  %v301_v32 = vperm.slane %v300_v31, 0  ;;  %v407_v48 = vmax.f32 %v403_v45, %v405_v47  ;;  %v412_v49 = vmax.f32 %v408_v44, %v410_v46 }
  0x17   : > { %v273_v7 = vrot.slane %v271_v6, 1  ;;  %366 = vmatpush.bf16.msra.mxu1 %v357_v17  ;;  %v452_v63 = vstv %s449_s26 }
  0x18   : > { %v302_v33 = vunpack.c.l.b16 %v301_v32  ;;  %v303_v34 = vunpack.c.h.b16 %v301_v32  ;;  %v414_v50 = vrot.slane %v412_v49, 1 }
  0x19   : > { %v274_v8 = vor.u32 %v273_v7, %v269_v5 }
  0x1a   : > { %564 = vmatmul.msk.bf16.vlgmr.msra.gmra.mxu1 %vm320_vm2, %v563_v24  ;;  %vm306_vm5 = vcmp.ne.s32.totalorder %v302_v33, %v304_v35  ;;  %vm307_vm6 = vcmp.ne.s32.totalorder %v303_v34, %v305_v36  ;;  %v416_v51 = vmax.f32 %v407_v48, %v414_v50 }
  0x1b   : > { %275 = vrot.lane.b32.xlu0 %v274_v8, %s633_s27  ;;  %v329_v16 = vand.u32 %v327_v15, %v274_v8  ;;  %vm308_vm8 = vmpackc.low %vm307_vm6, %vm306_vm5  ;;  %s574_s27 = sshll.u32 %s756_s20, 3 }
  0x1c   : > { %v418_v3 = vrot.slane %v416_v51, 3  ;;  %s256_s30 = scalar_lea.vmem %s750_s5, %s574_s27 }
  0x1d   : > { %338 = vmatpush.bf16.msra.mxu0 %v329_v16 }
  0x20   : > { %559 = vmatmul.msk.bf16.vlgmr.msra.gmra.mxu0 %vm320_vm2, %v558_v21 }
  0x23   : > { %425 = vperm.xlu0 %606, %v421_v28  }
  0x6a   : > { %v445_v8 = vpop.permute.xlu2 %444 }
  0x80   : > { %v431_v52 = vpop.permute.xlu1 %430 }
  0x88   : > { %v440_v59 = vpop.permute.xlu1 %439 }
  0x8d   : > { %v276_v37 = vpop.permute.xlu0 %275 }
  0x8e   : > { %v280_v38 = vsel %vm277_vm7, 0, %v276_v37 }
  0x8f   : > { %v309_v41 = vsel %vm308_vm8, 0, %v280_v38 }
  0x90   : > { %v385_v42 = vand.u32 %v327_v15, %v309_v41 }
  0x92   : > { %394 = vmatpush.bf16.msra.mxu2 %v385_v42 }
  0x95   : > { %571 = vmatmul.msk.bf16.vlgmr.msra.gmra.mxu2 %vm320_vm2, %v570_v43  ;;  %v426_v57 = vpop.permute.xlu0 %425 }
  0x97   : > { %v368_v54 = vpop.f32.mrf.mxu1 }
  0x9d   : > { %v340_v53 = vpop.f32.mrf.mxu0 }
  0x9e   : > { %v369_v55 = vadd.f32 %v368_v54, %v340_v53 }
  0x9f   : > { %v370_v62 = vpop.f32.mrf.mxu1 }
  0xa5   : > { %v342_v61 = vpop.f32.mrf.mxu0 }
  0xa6   : > { %v371_v1 = vadd.f32 %v370_v62, %v342_v61 }
 0x118   : > { %v396_v56 = vpop.f32.mrf.mxu2 }
 0x119   : > { %v401_v58 = vadd.f32 %v396_v56, %v369_v55 }
 0x11b   : > { %v433_v60 = vmul.f32 %v426_v57, %v401_v58 }
 0x11d   : > { %v447_v0 = vadd.f32 %v440_v59, %v433_v60 }
 0x11f   : > { %vm450_vm9 = vcmp.ge.f32.partialorder %v447_v0, 0.0  ;;  %v453_v2 = vmul.f32 %v452_v63, %v447_v0 }
 0x120   : > { %v398_v4 = vpop.f32.mrf.mxu2 }
 0x121   : > { %v455_v5 = vsel %vm450_vm9, %v447_v0, %v453_v2  ;;  %v402_v6 = vadd.f32 %v398_v4, %v371_v1 }
 0x122   : > { %v457_v7 = vpack.c.bf16 %v455_v5, %v455_v5 }
 0x123   : > { %v420_v9 = vsel %vm325_vm1, %v402_v6, %v418_v3 }
 0x124   : > { %460 = vst.msk [vmem:[%s256_s30] sm:$0xf] %vm459_vm10, %v457_v7  ;;  %v434_v10 = vmul.f32 %v431_v52, %v420_v9 }
 0x126   : > { %v448_v11 = vadd.f32 %v445_v8, %v434_v10 }
 0x128   : > { %vm451_vm11 = vcmp.ge.f32.partialorder %v448_v11, 0.0  ;;  %v454_v12 = vmul.f32 %v452_v63, %v448_v11 }
 0x12a   : > { %v456_v13 = vsel %vm451_vm11, %v448_v11, %v454_v12 }
 0x12b   : > { %v458_v14 = vpack.c.bf16 %v456_v13, %v456_v13 }
 0x12d   : > { %461 = vst.msk [vmem:[%s256_s30 + $0x4] sm:$0xf] %vm459_vm10, %v458_v14 }
 0x12e PF: > { %s16_s22 = sadd.s32 1, %s631_s22   ;;  %s751_s20 = smov %s627_s21 }
 0x12f   : > { %p13_p5 = scmp.ge.s32.totalorder %s16_s22, 4   ;;  %s752_s21 = smov %s754_s4 }
 0x131   :  { %15 = sbr.rel (!%p13_p5) target bundleno = 2 (0x2), region = 72 }

// kernel: initial_block_forward.2
= control target key start
LH: loop header
LB: loop body
LE: loop exit
PB: predicated region body
PF: predicated region fallthrough
CT: control target
= control target key end

     0   :  { %s633_s12 = smov 0   ;;  %s635_s13 = smov 0   ;;  %s731_s0 = inlined_call_operand.vmem [shape: bf16[2,18,64], index: 0, kind: input, shape index: {}]   ;;  %s732_s1 = inlined_call_operand.vmem [shape: bf16[3,13,9], index: 1, kind: input, shape index: {}]   ;;  %s733_s2 = inlined_call_operand.vmem [shape: f32[1,16,1], index: 2, kind: output, shape index: {0}]   ;;  %s734_s3 = inlined_call_operand.vmem [shape: f32[1,16,1], index: 3, kind: output, shape index: {1}]  }
   0x1   :  { %s637_s14 = smov 0  }
   0x2 LB: > { %s29_s15 = sadd.s32 1, %s603_s13  ;;  %p526_p0 = scmp.ge.s32.totalorder %s607_s14, 1  ;;  %s607_s14 = sphi %s637_s14, %s14_s14   ;;  %s603_s13 = sphi %s635_s13, %s736_s13   ;;  %s599_s12 = sphi %s633_s12, %s735_s12  }
   0x3   : > { %p31_p1 = scmp.ge.s32.totalorder %s29_s15, 2  ;;  %p168_p2 = scmp.lt.s32.totalorder %s607_s14, 3 }
   0x5   : > { %s738_s15 = smov (%p31_p1, %s29_s15), 0  ;;  %p169_p3 = pnand %p526_p0, %p168_p2 }
   0x6   : > { %p202_p4 = scmp.lt.s32.totalorder (!%p169_p3), %s599_s12, 1  ;;  %p224_p5 = scmp.eq.s32.totalorder (!%p169_p3), %s599_s12, 0 }
   0x7   : > { %172 = sbr.rel (%p169_p3) target bundleno = 421 (0x1a5), region = 28 }
   0xc   : > { %s740_s12 = smov (!%p202_p4, %s599_s12), 1  ;;  %229 = sbr.rel (!%p224_p5) target bundleno = 17 (0x11), region = 32  ;;  %vm230_vm0 = vcmask (%p224_p5), 7168   ;;  %v609_v0 = vmov (%p224_p5), 0.0  }
   0xd   : > { %s556_s16 = smul.u32 12, %s740_s12  ;;  %231 = vst.msk [vmem:[%s733_s2] sm:$0xff] (%p224_p5), %vm230_vm0, %v609_v0 }
   0xe   : > { %232 = vst.msk [vmem:[%s733_s2 + $0x8] sm:$0xff] (%p224_p5), %vm230_vm0, %v609_v0 }
   0xf   : > { %s209_s19 = scalar_lea.vmem %s731_s0, %s556_s16  ;;  %233 = vst.msk [vmem:[%s734_s3] sm:$0xff] (%p224_p5), %vm230_vm0, %v609_v0 }
  0x10   : > { %234 = vst.msk [vmem:[%s734_s3 + $0x8] sm:$0xff] (%p224_p5), %vm230_vm0, %v609_v0 }
  0x11 PF: > { %v236_v1 = vld [vmem:[%s209_s19 + $0x4] sm:$0xf]  ;;  %v237_v2 = vld [vmem:[%s209_s19 + $0x8] sm:$0x1]  ;;  %s610_s28 = smov 1   ;;  %vm299_vm1 = vcmask 1043456   ;;  %v257_v18 = vlaneseq }
  0x12   : > { %v240_v3 = vunpack.c.l.b16 %v236_v1  ;;  %v241_v4 = vunpack.c.l.b16 %v237_v2  ;;  %v235_v10 = vld [vmem:[%s209_s19] sm:$0xf]  ;;  %vm300_vm2 = vcmask 1044480   ;;  %v611_v12 = vmov 65535   ;;  %v533_v19 = vld [vmem:[%s732_s1 + $0x8] sm:$0xf] }
  0x13   : > { %v326_v11 = vunpack.c.l.b16 %v235_v10  ;;  %v301_v13 = vsel %vm299_vm1, 4294967295, %v611_v12  ;;  %v554_v20 = vld [vmem:[%s732_s1 + $0x8] sm:$0x70]  ;;  %vm295_vm3 = vcmask 72704   ;;  %v538_v22 = vld [vmem:[%s732_s1] sm:$0xf]  ;;  %v383_v41 = vunpack.c.l.bf16 %v236_v1 }
  0x14   : > { %v242_v5 = vpack.c.b16 %v241_v4, %v240_v3  ;;  %v302_v15 = vsel %vm300_vm2, %v301_v13, 0  ;;  %v534_v21 = vor.u32 %v554_v20, %v533_v19  ;;  %v553_v23 = vld [vmem:[%s732_s1] sm:$0x70]  ;;  %v258_v25 = vand.u32 127, %v257_v18  ;;  %v545_v36 = vld [vmem:[%s732_s1 + $0x10] sm:$0xf] }
  0x15   : > { %v327_v14 = vpack.c.b16 %v240_v3, %v326_v11  ;;  %v539_v24 = vor.u32 %v553_v23, %v538_v22  ;;  %v612_v27 = vmov 0   ;;  %vm252_vm8 = vcmask 7168   ;;  %v555_v37 = vld [vmem:[%s732_s1 + $0x10] sm:$0x70]  ;;  %v396_v3 = vld [vmem:[%s733_s2] sm:$0xff] }
  0x16   : > { %v244_v6 = vshrl.u32 %v242_v5, 16  ;;  %v246_v7 = vshll.u32 %v242_v5, 16  ;;  %v263_v26 = vand.u32 7, %v258_v25  ;;  %v279_v32 = vunpack.c.l.b16 %v612_v27  ;;  %v409_v12 = vld [vmem:[%s734_s3] sm:$0xff] }
  0x17   : > { %v332_v17 = vand.u32 %v327_v14, %v302_v15  ;;  %v280_v33 = vunpack.c.h.b16 %v612_v27  ;;  %v546_v40 = vor.u32 %v555_v37, %v545_v36  ;;  %v378_v42 = vunpack.c.l.bf16 %v235_v10 }
  0x18   : > { %v248_v8 = vrot.slane %v246_v7, 1  ;;  %vm271_vm4 = vcmp.eq.s32.totalorder %v263_v26, 0  ;;  %v385_v44 = vrot.slane %v383_v41, 3  ;;  %vm398_vm10 = vcmask 523264  }
  0x19   : > { %341 = vmatpush.bf16.msra.mxu1 %v332_v17  ;;  %vm274_vm5 = vmpackc.low %vm271_vm4, %vm271_vm4  ;;  %v380_v43 = vrot.slane %v378_v42, 3 }
  0x1a   : > { %v249_v9 = vor.u32 %v248_v8, %v244_v6  ;;  %v275_v28 = vsel %vm274_vm5, 65537, %v612_v27  ;;  %v387_v45 = vmax.f32 %v383_v41, %v385_v44  ;;  %v397_v6 = vld [vmem:[%s733_s2 + $0x8] sm:$0xff] }
  0x1b   : > { %v276_v29 = vperm.slane %v275_v28, 0  ;;  %v382_v46 = vmax.f32 %v378_v42, %v380_v43  ;;  %v410_v8 = vld [vmem:[%s734_s3 + $0x8] sm:$0xff] }
  0x1c   : > { %250 = vrot.lane.b32.xlu0 %v249_v9, %s610_s28  ;;  %v304_v16 = vand.u32 %v302_v15, %v249_v9  ;;  %540 = vmatmul.msk.bf16.vlgmr.msra.gmra.mxu1 %vm295_vm3, %v539_v24  ;;  %v389_v47 = vrot.slane %v387_v45, 1 }
  0x1d   : > { %v277_v30 = vunpack.c.l.b16 %v276_v29  ;;  %v278_v31 = vunpack.c.h.b16 %v276_v29 }
  0x1e   : > { %313 = vmatpush.bf16.msra.mxu0 %v304_v16  ;;  %v391_v48 = vmax.f32 %v382_v46, %v389_v47 }
  0x1f   : > { %vm281_vm6 = vcmp.ne.s32.totalorder %v277_v30, %v279_v32  ;;  %vm282_vm7 = vcmp.ne.s32.totalorder %v278_v31, %v280_v33 }
  0x20   : > { %vm283_vm9 = vmpackc.low %vm282_vm7, %vm281_vm6  ;;  %v393_v58 = vrot.slane %v391_v48, 3 }
  0x21   : > { %535 = vmatmul.msk.bf16.vlgmr.msra.gmra.mxu0 %vm295_vm3, %v534_v21 }
  0x8e   : > { %v251_v34 = vpop.permute.xlu0 %250 }
  0x8f   : > { %v255_v35 = vsel %vm252_vm8, 0, %v251_v34 }
  0x90   : > { %v284_v38 = vsel %vm283_vm9, 0, %v255_v35 }
  0x91   : > { %v360_v39 = vand.u32 %v302_v15, %v284_v38 }
  0x93   : > { %369 = vmatpush.bf16.msra.mxu2 %v360_v39 }
  0x96   : > { %547 = vmatmul.msk.bf16.vlgmr.msra.gmra.mxu2 %vm295_vm3, %v546_v40 }
  0x99   : > { %v343_v50 = vpop.f32.mrf.mxu1 }
  0x9e   : > { %v315_v49 = vpop.f32.mrf.mxu0 }
  0x9f   : > { %v344_v51 = vadd.f32 %v343_v50, %v315_v49 }
  0xa1   : > { %v345_v56 = vpop.f32.mrf.mxu1 }
  0xa6   : > { %v317_v55 = vpop.f32.mrf.mxu0 }
  0xa7   : > { %v346_v57 = vadd.f32 %v345_v56, %v317_v55 }
 0x119   : > { %v371_v52 = vpop.f32.mrf.mxu2 }
 0x11a   : > { %v376_v53 = vadd.f32 %v371_v52, %v344_v51 }
 0x11c   : > { %v399_v54 = vsel %vm398_vm10, %v376_v53, 0.0  ;;  %v411_v1 = vmul.f32 %v376_v53, %v376_v53 }
 0x11d   : > { %400 = vadd.xlane.f32.xlu0 %v399_v54 }
 0x11e   : > { %v413_v2 = vsel %vm398_vm10, %v411_v1, 0.0 }
 0x121   : > { %v373_v59 = vpop.f32.mrf.mxu2 }
 0x122   : > { %v377_v60 = vadd.f32 %v373_v59, %v346_v57 }
 0x124   : > { %v395_v61 = vsel %vm300_vm2, %v377_v60, %v393_v58 }
 0x125   : > { %v402_v62 = vsel %vm398_vm10, %v395_v61, 0.0  ;;  %v412_v63 = vmul.f32 %v395_v61, %v395_v61 }
 0x126   : > { %403 = vadd.xlane.f32.xlu1 %v402_v62 }
 0x127   : > { %v416_v0 = vsel %vm398_vm10, %v412_v63, 0.0 }
 0x128   : > { %417 = vadd.xlane.f32.xlu2 %v416_v0 }
 0x12e   : > { %414 = vadd.xlane.f32.xlu1 %v413_v2 }
 0x190   : > { %v401_v4 = vpop.xlane.xlu0 %400 }
 0x191   : > { %v405_v5 = vadd.f32 %v401_v4, %v396_v3 }
 0x193   : > { %407 = vst.msk [vmem:[%s733_s2] sm:$0xff] %vm252_vm8, %v405_v5 }
 0x199   : > { %v404_v7 = vpop.xlane.xlu1 %403 }
 0x19a   : > { %v406_v9 = vadd.f32 %v404_v7, %v397_v6 }
 0x19b   : > { %v418_v10 = vpop.xlane.xlu2 %417 }
 0x19c   : > { %408 = vst.msk [vmem:[%s733_s2 + $0x8] sm:$0xff] %vm252_vm8, %v406_v9  ;;  %v420_v11 = vadd.f32 %v418_v10, %v410_v8 }
 0x19e   : > { %422 = vst.msk [vmem:[%s734_s3 + $0x8] sm:$0xff] %vm252_vm8, %v420_v11 }
 0x1a1   : > { %v415_v13 = vpop.xlane.xlu1 %414 }
 0x1a2   : > { %v419_v14 = vadd.f32 %v415_v13, %v409_v12 }
 0x1a4   : > { %421 = vst.msk [vmem:[%s734_s3] sm:$0xff] %vm252_vm8, %v419_v14 }
 0x1a5 PF: > { %s14_s14 = sadd.s32 1, %s607_s14   ;;  %s735_s12 = smov %s603_s13 }
 0x1a6   : > { %p11_p6 = scmp.ge.s32.totalorder %s14_s14, 4   ;;  %s736_s13 = smov %s738_s15 }
 0x1a8   :  { %13 = sbr.rel (!%p11_p6) target bundleno = 2 (0x2), region = 76 }

</bundles_post_ra>
